<compile_context>
chip_gen: v7x
topology: tpu7x:2x2x1
jax: 0.10.0
libtpu: 0.0.40
codegen_flags: <defaults>
</compile_context>

<pallas_src>
import functools

import jax
import jax.numpy as jnp
from jax import lax
from jax.experimental import pallas as pl
from jax.experimental.pallas import tpu as pltpu


_VMEM_TILE_BUDGET = 40 * 1024 * 1024   # keep headroom vs. v7x's 64 MiB VMEM/TC
_VMEM_LIMIT_BYTES = 64 * 1024 * 1024   # above the 16/32 MiB scoped defaults


def _divisors_desc(n):
    return [d for d in range(n, 0, -1) if n % d == 0]


def _choose_tiles(B, S, D1, D2, in_itemsize, out_itemsize):
    """Pick (BT, TS) maximizing per-step DMA volume under the VMEM budget."""
    # Seq tiles must respect the (8, 128) sublane/lane tiling of the last two
    # block dims: TS is either the full S or a multiple of 8 that divides S.
    seq_cands = [d for d in _divisors_desc(S) if d == S or d % 8 == 0]

    def footprint(bt, ts):
        in_f = 2 * bt * ts * (D1 + D2) * in_itemsize   # double-buffered inputs
        out_f = 2 * bt * D1 * D2 * out_itemsize        # double-buffered output
        acc_f = bt * D1 * D2 * 4                       # f32 accumulator scratch
        return in_f + out_f + acc_f

    best = None
    for bt in _divisors_desc(B):
        for ts in seq_cands:
            if footprint(bt, ts) > _VMEM_TILE_BUDGET:
                continue
            score = bt * ts                            # per-step input volume
            if best is None or score > best[0]:
                best = (score, bt, ts)
    if best is None:
        # Feature dims too large for the budget: fall back to smallest tiles
        # and rely on the raised VMEM limit (see TODO above for D1/D2 tiling).
        return 1, seq_cands[-1]
    return best[1], best[2]


def _sfop_kernel(a_ref, b_ref, o_ref, acc_ref):
    """One (BT, TS) chunk of out[b] += input1[b]^T @ input2[b]."""
    k = pl.program_id(1)

    @pl.when(k == 0)
    def _init():
        acc_ref[...] = jnp.zeros_like(acc_ref)

    # Contract the seq axis (axis 1), batched over axis 0 -> (BT, D1, D2) f32.
    acc_ref[...] += lax.dot_general(
        a_ref[...],
        b_ref[...],
        dimension_numbers=(((1,), (1,)), ((0,), (0,))),
        preferred_element_type=jnp.float32,
    )

    @pl.when(k == pl.num_programs(1) - 1)
    def _writeback():
        o_ref[...] = acc_ref[...].astype(o_ref.dtype)


@functools.partial(jax.jit, static_argnames=("batch_tile", "seq_tile"))
def sum_flattened_outer_product(input1, input2, *, batch_tile=None, seq_tile=None):
    """Pallas implementation of SumFlattenedOuterProduct.forward.

    input1: (B, S, D1), input2: (B, S, D2) -> (1, B, D1*D2)
    """
    B, S, D1 = input1.shape
    B2, S2, D2 = input2.shape
    assert B == B2 and S == S2, (input1.shape, input2.shape)

    out_dtype = input1.dtype
    in_itemsize = jnp.dtype(input1.dtype).itemsize
    out_itemsize = jnp.dtype(out_dtype).itemsize

    auto_bt, auto_ts = _choose_tiles(B, S, D1, D2, in_itemsize, out_itemsize)
    BT = batch_tile if batch_tile is not None else auto_bt
    TS = seq_tile if seq_tile is not None else auto_ts
    assert B % BT == 0, (B, BT)
    assert S % TS == 0, (S, TS)

    grid = (B // BT, S // TS)

    cost = pl.CostEstimate(
        flops=2 * B * S * D1 * D2,
        transcendentals=0,
        bytes_accessed=int(
            B * S * (D1 + D2) * in_itemsize + B * D1 * D2 * out_itemsize
        ),
    )

    outer = pl.pallas_call(
        _sfop_kernel,
        out_shape=jax.ShapeDtypeStruct((B, D1, D2), out_dtype),
        grid_spec=pltpu.PrefetchScalarGridSpec(
            num_scalar_prefetch=0,
            grid=grid,
            in_specs=[
                pl.BlockSpec((BT, TS, D1), lambda b, k: (b, k, 0)),
                pl.BlockSpec((BT, TS, D2), lambda b, k: (b, k, 0)),
            ],
            out_specs=pl.BlockSpec((BT, D1, D2), lambda b, k: (b, 0, 0)),
            scratch_shapes=[pltpu.VMEM((BT, D1, D2), jnp.float32)],
        ),
        compiler_params=pltpu.CompilerParams(
            dimension_semantics=("parallel", "arbitrary"),
            vmem_limit_bytes=_VMEM_LIMIT_BYTES,
        ),
        cost_estimate=cost,
    )(input1, input2)

    # view(B, -1).unsqueeze(0) -> (1, B, D1*D2)   (pure shape glue in JAX)
    return outer.reshape(B, D1 * D2)[None, :, :]


def _reference(input1, input2):
    outer = jnp.einsum("bsi,bsj->bij", input1, input2)
    return outer.reshape(outer.shape[0], -1)[None, :, :]


def _check(out, input1, input2):
    B, _, D1 = input1.shape
    D2 = input2.shape[-1]
    ref = _reference(input1, input2)
    assert out.shape == (1, B, D1 * D2), out.shape
    err = float(jnp.max(jnp.abs(out - ref)))
    assert jnp.allclose(out, ref, atol=1e-4, rtol=1e-4), err


if __name__ == "__main__":
    key = jax.random.PRNGKey(0)
    k1, k2, k3, k4 = jax.random.split(key, 4)

    # Test 1: original toy shape, tiles chosen automatically (grid = (1, 1)).
    B, S, D1, D2 = 2, 8, 32, 32
    input1 = jax.random.normal(k1, (B, S, D1), dtype=jnp.float32)
    input2 = jax.random.normal(k2, (B, S, D2), dtype=jnp.float32)
    out = jax.block_until_ready(sum_flattened_outer_product(input1, input2))
    _check(out, input1, input2)

    # Test 2: force a multi-step grid to exercise the S-reduction accumulator
    # and the parallel batch axis (grid = (2, 2)).
    B2_, S2_, D1b, D2b = 4, 16, 32, 16
    a2 = jax.random.normal(k3, (B2_, S2_, D1b), dtype=jnp.float32)
    b2 = jax.random.normal(k4, (B2_, S2_, D2b), dtype=jnp.float32)
    out2 = jax.block_until_ready(
        sum_flattened_outer_product(a2, b2, batch_tile=2, seq_tile=8)
    )
    _check(out2, a2, b2)

    print("KERNEL_OK")
</pallas_src>

<mosaic_0001>
module attributes {stable_mosaic.version = 11 : i64} {
  func.func @_sfop_kernel(%arg0: i32, %arg1: i32, %arg2: memref<2x8x32xf32, #tpu.memory_space<vmem>>, %arg3: memref<2x8x32xf32, #tpu.memory_space<vmem>>, %arg4: memref<2x32x32xf32, #tpu.memory_space<vmem>>, %arg5: memref<2x32x32xf32, #tpu.memory_space<vmem>>) attributes {dimension_semantics = [#tpu.dimension_semantics<parallel>, #tpu.dimension_semantics<arbitrary>], iteration_bounds = array<i64: 1, 1>, scalar_prefetch = 0 : i64, scratch_operands = 1 : i64, tpu.core_type = #tpu.core_type<tc>, window_params = [{transform_indices = @transform_0, window_bounds = array<i64: 2, 8, 32>}, {transform_indices = @transform_1, window_bounds = array<i64: 2, 8, 32>}, {transform_indices = @transform_2, window_bounds = array<i64: 2, 32, 32>}]} {
    %c0_i32 = arith.constant 0 : i32
    %0 = arith.cmpi eq, %arg1, %c0_i32 : i32
    %1 = arith.extui %0 : i1 to i32
    %c0_i32_0 = arith.constant 0 : i32
    %2 = arith.cmpi ne, %1, %c0_i32_0 : i32
    scf.if %2 {
      %cst_14 = arith.constant 0.000000e+00 : f32
      %12 = vector.broadcast %cst_14 : f32 to vector<2x32x32xf32>
      %c0_15 = arith.constant 0 : index
      %c0_16 = arith.constant 0 : index
      %c0_17 = arith.constant 0 : index
      %13 = vector.load %arg5[%c0_15, %c0_16, %c0_17] : memref<2x32x32xf32, #tpu.memory_space<vmem>>, vector<2x32x32xf32>
      tpu.vector_store %arg5[%c0_15, %c0_16, %c0_17], %12 {strides = array<i32>} : memref<2x32x32xf32, #tpu.memory_space<vmem>>, vector<2x32x32xf32>,
    } else {
    }
    %c0 = arith.constant 0 : index
    %c0_1 = arith.constant 0 : index
    %c0_2 = arith.constant 0 : index
    %3 = vector.load %arg5[%c0, %c0_1, %c0_2] : memref<2x32x32xf32, #tpu.memory_space<vmem>>, vector<2x32x32xf32>
    %c0_3 = arith.constant 0 : index
    %c0_4 = arith.constant 0 : index
    %c0_5 = arith.constant 0 : index
    %4 = vector.load %arg2[%c0_3, %c0_4, %c0_5] : memref<2x8x32xf32, #tpu.memory_space<vmem>>, vector<2x8x32xf32>
    %c0_6 = arith.constant 0 : index
    %c0_7 = arith.constant 0 : index
    %c0_8 = arith.constant 0 : index
    %5 = vector.load %arg3[%c0_6, %c0_7, %c0_8] : memref<2x8x32xf32, #tpu.memory_space<vmem>>, vector<2x8x32xf32>
    %cst = arith.constant dense<0.000000e+00> : vector<2x32x32xf32>
    %6 = tpu.matmul %4, %5, %cst {dimension_numbers = #tpu.dot_dimension_numbers<[1], [1], [2], [2], [0, 0, 0, 2, 1, 2], [0], [0]>} : vector<2x8x32xf32>, vector<2x8x32xf32>, vector<2x32x32xf32> -> vector<2x32x32xf32>
    %7 = arith.addf %3, %6 : vector<2x32x32xf32>
    %c0_9 = arith.constant 0 : index
    %c0_10 = arith.constant 0 : index
    %c0_11 = arith.constant 0 : index
    %8 = vector.load %arg5[%c0_9, %c0_10, %c0_11] : memref<2x32x32xf32, #tpu.memory_space<vmem>>, vector<2x32x32xf32>
    tpu.vector_store %arg5[%c0_9, %c0_10, %c0_11], %7 {strides = array<i32>} : memref<2x32x32xf32, #tpu.memory_space<vmem>>, vector<2x32x32xf32>,
    %c0_i32_12 = arith.constant 0 : i32
    %9 = arith.cmpi eq, %arg1, %c0_i32_12 : i32
    %10 = arith.extui %9 : i1 to i32
    %c0_i32_13 = arith.constant 0 : i32
    %11 = arith.cmpi ne, %10, %c0_i32_13 : i32
    scf.if %11 {
      %c0_14 = arith.constant 0 : index
      %c0_15 = arith.constant 0 : index
      %c0_16 = arith.constant 0 : index
      %12 = vector.load %arg5[%c0_14, %c0_15, %c0_16] : memref<2x32x32xf32, #tpu.memory_space<vmem>>, vector<2x32x32xf32>
      %c0_17 = arith.constant 0 : index
      %c0_18 = arith.constant 0 : index
      %c0_19 = arith.constant 0 : index
      %13 = vector.load %arg4[%c0_17, %c0_18, %c0_19] : memref<2x32x32xf32, #tpu.memory_space<vmem>>, vector<2x32x32xf32>
      tpu.vector_store %arg4[%c0_17, %c0_18, %c0_19], %12 {strides = array<i32>} : memref<2x32x32xf32, #tpu.memory_space<vmem>>, vector<2x32x32xf32>,
    } else {
    }
    return
  }
  func.func @transform_0(%arg0: i32, %arg1: i32) -> (i32, i32, i32) {
    %c0_i32 = arith.constant 0 : i32
    %c0_i32_0 = arith.constant 0 : i32
    return %arg0, %arg1, %c0_i32 : i32, i32, i32
  }
  func.func @transform_1(%arg0: i32, %arg1: i32) -> (i32, i32, i32) {
    %c0_i32 = arith.constant 0 : i32
    %c0_i32_0 = arith.constant 0 : i32
    return %arg0, %arg1, %c0_i32 : i32, i32, i32
  }
  func.func @transform_2(%arg0: i32, %arg1: i32) -> (i32, i32, i32) {
    %c0_i32 = arith.constant 0 : i32
    %c0_i32_0 = arith.constant 0 : i32
    %c0_i32_1 = arith.constant 0 : i32
    return %arg0, %c0_i32, %c0_i32_0 : i32, i32, i32
  }
}

</mosaic_0001>

<bundles_post_ra>
// kernel: sum_flattened_outer_product.1
= control target key start
LH: loop header
LB: loop body
LE: loop exit
PB: predicated region body
PF: predicated region fallthrough
CT: control target
= control target key end

     0   :  { %7 = vsyncpa [#allocation4], 0  ;;  %s588_s0 = inlined_call_operand.hbm [shape: f32[2,8,32], index: 0, kind: input, shape index: {}]   ;;  %s589_s1 = inlined_call_operand.hbm [shape: f32[2,8,32], index: 1, kind: input, shape index: {}]   ;;  %s590_s2 = inlined_call_operand.hbm [shape: f32[2,32,32], index: 2, kind: output, shape index: {}]  }
   0x1   :  { %8 = vsyncpa [#allocation7], 0 }
   0x2   :  { %9 = vsyncpa [#allocation5], 0  ;;  %s490_s9 = smov [#allocation3]   ;;  %s418_s13 = scalar_lea.hbm %s588_s0, 256 }
   0x3   :  { %s15_s10 = sshll.u32 %s490_s9, 4  ;;  %p419_p0 = scmp.ne.s32.totalorder %s588_s0, %s418_s13  ;;  %s16_s10 = int_to_ptr.vmem [resolvable:$true] %s15_s10 }
   0x4   :  { %p422_p1 = scmp.lt.u32.totalorder %s418_s13, %s588_s0 }
   0x6   :  { %p424_p2 = pnand %p422_p1, %p419_p0 }
   0x8   :  { %427 = shalt.err (!%p424_p2)
}
   0x9   :  { %s428_s18 = scalar_lea.vmem %s16_s10, 256  ;;  %p433_p4 = scmp.lt.s32.totalorder %s16_s10, %s16_s10 }
   0xa   :  { %p429_p3 = scmp.ne.s32.totalorder %s16_s10, %s428_s18  ;;  %p434_p5 = scmp.lt.s32.totalorder %s428_s18, %s428_s18 }
   0xc   :  { %p435_p6 = por %p434_p5, %p433_p4 }
   0xe   :  { %p436_p7 = pnand %p435_p6, %p429_p3 }
  0x10   :  { %439 = shalt.err (!%p436_p7)
}
  0x11   :  { %s491_s19 = smov 128   ;;  %s492_s20 = smov 8  }
  0x12   :  { %21 = dma.hbm_to_vmem [thread:$0]  %s588_s0, 256, %s16_s10, [#allocation4], %s491_s19, %s491_s19, %s492_s20  }
  0x13   :  { %s493_s23 = smov [#allocation6]   ;;  %s440_s27 = scalar_lea.hbm %s589_s1, 256 }
  0x14   :  { %s27_s24 = sshll.u32 %s493_s23, 4  ;;  %p441_p8 = scmp.ne.s32.totalorder %s589_s1, %s440_s27  ;;  %s28_s24 = int_to_ptr.vmem [resolvable:$true] %s27_s24 }
  0x15   :  { %p444_p9 = scmp.lt.u32.totalorder %s440_s27, %s589_s1 }
  0x17   :  { %p446_p10 = pnand %p444_p9, %p441_p8 }
  0x19   :  { %449 = shalt.err (!%p446_p10)
}
  0x1a   :  { %s450_s4 = scalar_lea.vmem %s28_s24, 256  ;;  %p455_p12 = scmp.lt.s32.totalorder %s28_s24, %s28_s24 }
  0x1b   :  { %p451_p11 = scmp.ne.s32.totalorder %s28_s24, %s450_s4  ;;  %p456_p13 = scmp.lt.s32.totalorder %s450_s4, %s450_s4 }
  0x1d   :  { %p457_p0 = por %p456_p13, %p455_p12 }
  0x1f   :  { %p458_p1 = pnand %p457_p0, %p451_p11 }
  0x21   :  { %461 = shalt.err (!%p458_p1)
}
  0x22   :  { %33 = dma.hbm_to_vmem [thread:$0]  %s589_s1, 256, %s28_s24, [#allocation7], %s491_s19, %s491_s19, %s492_s20  }
  0x23   :  { %484 = dma.done.wait [#allocation4], 256  }
  0x24   :  { %485 = vsyncadd [#allocation4], 4294967040 }
  0x25   :  { %486 = dma.done.wait [#allocation7], 256  }
  0x26   :  { %487 = vsyncadd [#allocation7], 4294967040  ;;  %v61_v0 = vld [vmem:[#allocation3] sm:$0xff]  ;;  %v63_v1 = vld [vmem:[#allocation6] sm:$0xff]  ;;  %vm44_vm0 = vcmask 261120   ;;  %v494_v4 = vmov 0.0  }
  0x27   :  { %65 = vxpose.xlu0.b32.start.end [1/1] (short) (narrow) %v61_v0, 32  ;;  %396 = vmatprep.subr.mxu0 %v63_v1  ;;  %v62_v2 = vld [vmem:[#allocation3 + $0x8] sm:$0xff]  ;;  %v64_v3 = vld [vmem:[#allocation6 + $0x8] sm:$0xff]  ;;  %46 = vst.msk [vmem:[#allocation2 + $0x8] sm:$0xff] %vm44_vm0, %v494_v4  ;;  %45 = vst.msk [vmem:[#allocation2] sm:$0xff] %vm44_vm0, %v494_v4  ;;  %vm97_vm1 = vcmask 64512  }
  0x28   :  { %397 = vmatpush3.msra.mxu0 %v63_v1  ;;  %404 = vmatprep.subr.mxu1 %v64_v3  ;;  %47 = vst.msk [vmem:[#allocation2 + $0x10] sm:$0xff] %vm44_vm0, %v494_v4  ;;  %48 = vst.msk [vmem:[#allocation2 + $0x18] sm:$0xff] %vm44_vm0, %v494_v4  ;;  %s495_s1 = smov [#allocation8]  }
  0x29   :  { %405 = vmatpush3.msra.mxu1 %v64_v3  ;;  %49 = vst.msk [vmem:[#allocation2 + $0x20] sm:$0xff] %vm44_vm0, %v494_v4  ;;  %50 = vst.msk [vmem:[#allocation2 + $0x28] sm:$0xff] %vm44_vm0, %v494_v4  ;;  %s365_s6 = sshll.u32 %s495_s1, 4  ;;  %s366_s6 = int_to_ptr.vmem [resolvable:$true] %s365_s6 }
  0x2a   :  { %51 = vst.msk [vmem:[#allocation2 + $0x30] sm:$0xff] %vm44_vm0, %v494_v4  ;;  %52 = vst.msk [vmem:[#allocation2 + $0x38] sm:$0xff] %vm44_vm0, %v494_v4  ;;  %s462_s7 = scalar_lea.vmem %s366_s6, 1024  ;;  %p467_p3 = scmp.lt.s32.totalorder %s366_s6, %s366_s6 }
  0x2b   :  { %p463_p2 = scmp.ne.s32.totalorder %s366_s6, %s462_s7  ;;  %p468_p4 = scmp.lt.s32.totalorder %s462_s7, %s462_s7 }
  0x2d   :  { %p469_p5 = por %p468_p4, %p467_p3 }
  0x2e   :  { %v54_v13 = vld [vmem:[#allocation2 + $0x8] sm:$0xff]  ;;  %v53_v14 = vld [vmem:[#allocation2] sm:$0xff] }
  0x2f   :  { %v56_v19 = vld [vmem:[#allocation2 + $0x18] sm:$0xff]  ;;  %v55_v20 = vld [vmem:[#allocation2 + $0x10] sm:$0xff]  ;;  %p470_p6 = pnand %p469_p5, %p463_p2 }
  0x30   :  { %v58_v27 = vld [vmem:[#allocation2 + $0x28] sm:$0xff]  ;;  %v57_v28 = vld [vmem:[#allocation2 + $0x20] sm:$0xff] }
  0x31   :  { %v60_v35 = vld [vmem:[#allocation2 + $0x38] sm:$0xff]  ;;  %v59_v36 = vld [vmem:[#allocation2 + $0x30] sm:$0xff] }
  0x34   :  { %195 = vxpose.xlu0.b32.start.end [1/1] (short) (narrow) %v62_v2, 32 }
  0xa7   :  { %v81_v5 = vpop.trf.xlu0 }
  0xa8   :  { %398 = vmatprep.mubr.msk.f32.mxu0 %vm97_vm1, %v81_v5 }
  0xab   :  { %v82_v6 = vpop.trf.xlu0 }
  0xac   :  { %399 = vmatmul.mubr.msk.f32.vlgmr.msra.gmra.mrb[0].mxu0 %vm97_vm1, %v82_v6 }
  0xaf   :  { %v83_v7 = vpop.trf.xlu0 }
  0xb0   :  { %401 = vmatprep.mubr.msk.f32.mxu0 %vm97_vm1, %v83_v7 }
  0xb3   :  { %v84_v8 = vpop.trf.xlu0 }
  0xb4   :  { %402 = vmatmul.mubr.msk.f32.gmra.mrb[2].mxu0 %vm97_vm1, %v84_v8 }
  0xb7   :  { %v211_v9 = vpop.trf.xlu0 }
  0xb8   :  { %406 = vmatprep.mubr.msk.f32.mxu1 %vm97_vm1, %v211_v9 }
  0xbb   :  { %v212_v10 = vpop.trf.xlu0 }
  0xbc   :  { %407 = vmatmul.mubr.msk.f32.vlgmr.msra.gmra.mrb[0].mxu1 %vm97_vm1, %v212_v10 }
  0xbf   :  { %v213_v11 = vpop.trf.xlu0 }
  0xc0   :  { %409 = vmatprep.mubr.msk.f32.mxu1 %vm97_vm1, %v213_v11 }
  0xc3   :  { %v214_v12 = vpop.trf.xlu0 }
  0xc4   :  { %410 = vmatmul.mubr.msk.f32.gmra.mrb[2].mxu1 %vm97_vm1, %v214_v12 }
 0x17f   :  { %v400_v15 = vpop.f32.mrb[0].mxu0 }
 0x180   :  { %v325_v16 = vadd.f32 %v400_v15, %v54_v13  ;;  %v176_v17 = vpop.f32.mrb[1].mxu0 }
 0x181   :  { %v324_v18 = vadd.f32 %v176_v17, %v53_v14 }
 0x182   :  { %334 = vst.msk [vmem:[#allocation2 + $0x8] sm:$0xff] %vm44_vm0, %v325_v16 }
 0x183   :  { %333 = vst.msk [vmem:[#allocation2] sm:$0xff] %vm44_vm0, %v324_v18 }
 0x187   :  { %v403_v21 = vpop.f32.mrb[2].mxu0 }
 0x188   :  { %v327_v22 = vadd.f32 %v403_v21, %v56_v19  ;;  %v186_v23 = vpop.f32.mrb[3].mxu0 }
 0x189   :  { %v326_v24 = vadd.f32 %v186_v23, %v55_v20  ;;  %v345_v25 = vld [vmem:[#allocation2 + $0x8] sm:$0xff] }
 0x18a   :  { %336 = vst.msk [vmem:[#allocation2 + $0x18] sm:$0xff] %vm44_vm0, %v327_v22  ;;  %v344_v26 = vld [vmem:[#allocation2] sm:$0xff]  ;;  %353 = vst.msk [vmem:[#allocation8 + $0x8] sm:$0xff] %vm44_vm0, %v345_v25 }
 0x18b   :  { %335 = vst.msk [vmem:[#allocation2 + $0x10] sm:$0xff] %vm44_vm0, %v326_v24  ;;  %352 = vst.msk [vmem:[#allocation8] sm:$0xff] %vm44_vm0, %v344_v26 }
 0x18f   :  { %v408_v29 = vpop.f32.mrb[0].mxu1 }
 0x190   :  { %v329_v30 = vadd.f32 %v408_v29, %v58_v27  ;;  %v305_v31 = vpop.f32.mrb[1].mxu1 }
 0x191   :  { %v328_v32 = vadd.f32 %v305_v31, %v57_v28  ;;  %v347_v33 = vld [vmem:[#allocation2 + $0x18] sm:$0xff] }
 0x192   :  { %338 = vst.msk [vmem:[#allocation2 + $0x28] sm:$0xff] %vm44_vm0, %v329_v30  ;;  %v346_v34 = vld [vmem:[#allocation2 + $0x10] sm:$0xff]  ;;  %355 = vst.msk [vmem:[#allocation8 + $0x18] sm:$0xff] %vm44_vm0, %v347_v33 }
 0x193   :  { %337 = vst.msk [vmem:[#allocation2 + $0x20] sm:$0xff] %vm44_vm0, %v328_v32  ;;  %354 = vst.msk [vmem:[#allocation8 + $0x10] sm:$0xff] %vm44_vm0, %v346_v34 }
 0x197   :  { %v411_v37 = vpop.f32.mrb[2].mxu1 }
 0x198   :  { %v331_v38 = vadd.f32 %v411_v37, %v60_v35  ;;  %v315_v39 = vpop.f32.mrb[3].mxu1 }
 0x199   :  { %v330_v40 = vadd.f32 %v315_v39, %v59_v36  ;;  %v349_v41 = vld [vmem:[#allocation2 + $0x28] sm:$0xff] }
 0x19a   :  { %340 = vst.msk [vmem:[#allocation2 + $0x38] sm:$0xff] %vm44_vm0, %v331_v38  ;;  %v348_v42 = vld [vmem:[#allocation2 + $0x20] sm:$0xff]  ;;  %357 = vst.msk [vmem:[#allocation8 + $0x28] sm:$0xff] %vm44_vm0, %v349_v41 }
 0x19b   :  { %339 = vst.msk [vmem:[#allocation2 + $0x30] sm:$0xff] %vm44_vm0, %v330_v40  ;;  %356 = vst.msk [vmem:[#allocation8 + $0x20] sm:$0xff] %vm44_vm0, %v348_v42 }
 0x1a1   :  { %v351_v43 = vld [vmem:[#allocation2 + $0x38] sm:$0xff] }
 0x1a2   :  { %v350_v44 = vld [vmem:[#allocation2 + $0x30] sm:$0xff]  ;;  %359 = vst.msk [vmem:[#allocation8 + $0x38] sm:$0xff] %vm44_vm0, %v351_v43 }
 0x1a3   :  { %358 = vst.msk [vmem:[#allocation8 + $0x30] sm:$0xff] %vm44_vm0, %v350_v44 }
 0x1a4   :  { %473 = shalt.err (!%p470_p6)
}
 0x1a5   :  { %s474_s10 = scalar_lea.hbm %s590_s2, 1024 }
 0x1a6   :  { %p475_p7 = scmp.ne.s32.totalorder %s590_s2, %s474_s10  ;;  %p478_p8 = scmp.lt.u32.totalorder %s474_s10, %s590_s2 }
 0x1a8   :  { %p480_p9 = pnand %p478_p8, %p475_p7 }
 0x1aa   :  { %483 = shalt.err (!%p480_p9)
}
 0x1ab   :  { %371 = dma.vmem_to_hbm [thread:$0]  %s366_s6, 1024, %s590_s2, [#allocation5], %s491_s19, %s491_s19, %s492_s20  }
 0x1ac   :  { %488 = dma.done.wait [#allocation5], 1024  }
 0x1ad   :  { %489 = vsyncadd [#allocation5], 4294966272 }
 0x1ae   :  { %375 = vsyncpa [#allocation4], 1 }
 0x1af   :  { %376 = vsyncpa [#allocation7], 1 }
 0x1b0   :  { %377 = vsyncpa [#allocation5], 1 }

</bundles_post_ra>
